<compile_context>
chip_gen: v7x
topology: tpu7x:2x2x1
jax: 0.10.0
libtpu: 0.0.40
codegen_flags: <defaults>
</compile_context>

<pallas_src>
import jax
import jax.numpy as jnp
from jax.experimental import pallas as pl
from jax.experimental.pallas import tpu as pltpu


def _clip_avg_pool_kernel(x_ref, w_ref, b_ref, p_ref, mask_ref, out_ref):
    # x_ref    : (1, Cin_g, T)        one (group, batch) slice, NCW layout (T on lanes)
    # w_ref    : (1, Cout_g, Cin_g)   per-group 1x1-conv weight
    # b_ref    : (1, Cout_g, 1)       per-group bias
    # p_ref    : (T, Tout)            pooling matrix, pre-scaled by 1/kernel_size
    # mask_ref : (1, 1, Tout)         precomputed pooled mask (0/1)
    # out_ref  : (1, Cout_g, Tout)
    x = x_ref[0]                                   # (Cin_g, T)
    w = w_ref[0]                                   # (Cout_g, Cin_g)
    b = b_ref[0]                                   # (Cout_g, 1)

    # 1x1 grouped conv (NCW): h = relu(W @ x + b)  -> (Cout_g, T)
    h = jnp.maximum(jnp.dot(w, x, preferred_element_type=jnp.float32) + b, 0.0)

    # AvgPool1d over time: h @ P (1/kernel_size folded into P)  -> (Cout_g, Tout)
    pooled = jnp.dot(h, p_ref[...], preferred_element_type=jnp.float32)

    # Apply pooled mask (broadcast over channels) fused with the output store.
    out_ref[0] = (pooled * mask_ref[0]).astype(out_ref.dtype)


def clip_avg_pool(visual_input, visual_mask, weight, bias, *,
                  kernel_size, stride, groups=1):
    """visual_input: (B, Cin*G, T) f32;  visual_mask: (B, 1, T) f32
       weight: torch Conv1d layout (Cout*G, Cin, 1);  bias: (Cout*G,)
       returns (vis_h (B, Cout*G, Tout), mask (B, 1, Tout)) — NCW, like the torch module."""
    B, cin_total, T = visual_input.shape
    cout_total = weight.shape[0]
    cin_g = cin_total // groups
    cout_g = cout_total // groups
    t_out = (T - kernel_size) // stride + 1

    x = visual_input.astype(jnp.float32)

    # Per-group weights/bias.  Conv1d grouped layout: output channel o belongs to group
    # o // cout_g and consumes input channels [g*cin_g : (g+1)*cin_g]  ->  reshape is exact.
    w_g = weight[:, :, 0].astype(jnp.float32).reshape(groups, cout_g, cin_g)
    b_g = bias.astype(jnp.float32).reshape(groups, cout_g, 1)

    # Window-indicator matrix (T, Tout): ones over each pooling window.
    t_idx = jnp.arange(T)[:, None]
    start = (jnp.arange(t_out) * stride)[None, :]
    p_ones = ((t_idx >= start) & (t_idx < start + kernel_size)).astype(jnp.float32)
    p_div = p_ones / float(kernel_size)            # avg divide folded into the MXU op

    # Pooled mask in pure JAX (tiny, (B,1,Tout)).  Un-divided window-sum == kernel_size:
    # exact for 0/1 masks and equivalent to torch's (avg_pool1d(mask) == 1) test.
    m = visual_mask.astype(jnp.float32)
    m_sum = jnp.einsum('bct,to->bco', m, p_ones)                # (B, 1, Tout)
    mask = (m_sum == float(kernel_size)).astype(jnp.float32)    # (B, 1, Tout)

    out = pl.pallas_call(
        _clip_avg_pool_kernel,
        out_shape=jax.ShapeDtypeStruct((B, cout_total, t_out), jnp.float32),
        grid_spec=pltpu.PrefetchScalarGridSpec(
            num_scalar_prefetch=0,
            # B innermost: per-group W/b (and the constant pool matrix) keep the same
            # block index across the batch loop -> fetched once per group, not per step.
            grid=(groups, B),
            in_specs=[
                pl.BlockSpec((1, cin_g, T),      lambda g, b: (b, g, 0)),   # x (NCW)
                pl.BlockSpec((1, cout_g, cin_g), lambda g, b: (g, 0, 0)),   # per-group W
                pl.BlockSpec((1, cout_g, 1),     lambda g, b: (g, 0, 0)),   # per-group bias
                pl.BlockSpec((T, t_out),         lambda g, b: (0, 0)),      # pool matrix
                pl.BlockSpec((1, 1, t_out),      lambda g, b: (b, 0, 0)),   # pooled mask
            ],
            out_specs=pl.BlockSpec((1, cout_g, t_out), lambda g, b: (b, g, 0)),
        ),
        compiler_params=pltpu.CompilerParams(
            dimension_semantics=("parallel", "parallel")),
    )(x, w_g, b_g, p_div, mask)

    return out, mask


def _reference(x, m, weight, bias, ks, st, groups):
    """Pure-JAX reference mirroring the PyTorch forward."""
    B, Cin, T = x.shape
    Cout = weight.shape[0]
    cin_g, cout_g = Cin // groups, Cout // groups
    hs = []
    for g in range(groups):
        xg = x[:, g * cin_g:(g + 1) * cin_g, :]
        wg = weight[g * cout_g:(g + 1) * cout_g, :, 0]
        hs.append(jnp.einsum('oc,bct->bot', wg, xg))
    h = jnp.concatenate(hs, axis=1) + bias[None, :, None]
    h = jnp.maximum(h, 0.0)
    t_out = (T - ks) // st + 1
    pooled = jnp.stack([h[:, :, t * st:t * st + ks].mean(-1)
                        for t in range(t_out)], axis=-1)
    m_pool = jnp.stack([m[:, :, t * st:t * st + ks].mean(-1)
                        for t in range(t_out)], axis=-1)
    mask = (m_pool == 1.0).astype(jnp.float32)
    return pooled * mask, mask


def _run_case(B, input_size, hidden_size, T, kernel_size, stride, groups, lengths, key):
    k_x, k_w, k_b = jax.random.split(key, 3)
    visual_input = jax.random.normal(k_x, (B, input_size * groups, T), jnp.float32)
    visual_mask = (jnp.arange(T)[None, None, :] <
                   jnp.asarray(lengths)[:, None, None]).astype(jnp.float32)
    weight = 0.1 * jax.random.normal(k_w, (hidden_size * groups, input_size, 1), jnp.float32)
    bias = 0.01 * jax.random.normal(k_b, (hidden_size * groups,), jnp.float32)

    vis_h, mask = clip_avg_pool(visual_input, visual_mask, weight, bias,
                                kernel_size=kernel_size, stride=stride, groups=groups)
    jax.block_until_ready((vis_h, mask))

    ref_h, ref_m = _reference(visual_input, visual_mask, weight, bias,
                              kernel_size, stride, groups)
    t_out = (T - kernel_size) // stride + 1
    assert vis_h.shape == (B, hidden_size * groups, t_out)
    assert mask.shape == (B, 1, t_out)
    assert jnp.allclose(vis_h, ref_h, atol=1e-5, rtol=1e-5)
    assert jnp.allclose(mask, ref_m)


if __name__ == "__main__":
    key = jax.random.PRNGKey(0)
    k1, k2 = jax.random.split(key)

    # cfg: INPUT_SIZE=32, HIDDEN_SIZE=32, KERNEL_SIZE=4, STRIDE=4, GROUPS=1
    _run_case(B=2, input_size=32, hidden_size=32, T=16,
              kernel_size=4, stride=4, groups=1, lengths=[16, 10], key=k1)

    # grouped-conv path: GROUPS=2
    _run_case(B=2, input_size=16, hidden_size=16, T=16,
              kernel_size=4, stride=4, groups=2, lengths=[16, 9], key=k2)

    print("KERNEL_OK")
</pallas_src>

<mosaic_0001>
module attributes {stable_mosaic.version = 11 : i64} {
  func.func @_clip_avg_pool_kernel(%arg0: i32, %arg1: i32, %arg2: memref<1x32x16xf32, #tpu.memory_space<vmem>>, %arg3: memref<1x32x32xf32, #tpu.memory_space<vmem>>, %arg4: memref<1x32x1xf32, #tpu.memory_space<vmem>>, %arg5: memref<16x4xf32, #tpu.memory_space<vmem>>, %arg6: memref<1x1x4xf32, #tpu.memory_space<vmem>>, %arg7: memref<1x32x4xf32, #tpu.memory_space<vmem>>) attributes {dimension_semantics = [#tpu.dimension_semantics<parallel>, #tpu.dimension_semantics<parallel>], iteration_bounds = array<i64: 1, 2>, scalar_prefetch = 0 : i64, scratch_operands = 0 : i64, tpu.core_type = #tpu.core_type<tc>, window_params = [{transform_indices = @transform_0, window_bounds = array<i64: 1, 32, 16>}, {transform_indices = @transform_1, window_bounds = array<i64: 1, 32, 32>}, {transform_indices = @transform_2, window_bounds = array<i64: 1, 32, 1>}, {pipeline_mode = #tpu.pipeline_mode<synchronous>, transform_indices = @transform_3, window_bounds = array<i64: 16, 4>}, {transform_indices = @transform_4, window_bounds = array<i64: 1, 1, 4>}, {transform_indices = @transform_5, window_bounds = array<i64: 1, 32, 4>}]} {
    %c0 = arith.constant 0 : index
    %c0_0 = arith.constant 0 : index
    %c0_1 = arith.constant 0 : index
    %0 = vector.load %arg2[%c0, %c0_0, %c0_1] : memref<1x32x16xf32, #tpu.memory_space<vmem>>, vector<1x32x16xf32>
    %1 = vector.shape_cast %0 : vector<1x32x16xf32> to vector<32x16xf32>
    %c0_2 = arith.constant 0 : index
    %c0_3 = arith.constant 0 : index
    %c0_4 = arith.constant 0 : index
    %2 = vector.load %arg3[%c0_2, %c0_3, %c0_4] : memref<1x32x32xf32, #tpu.memory_space<vmem>>, vector<1x32x32xf32>
    %3 = vector.shape_cast %2 : vector<1x32x32xf32> to vector<32x32xf32>
    %c0_5 = arith.constant 0 : index
    %c0_6 = arith.constant 0 : index
    %c0_7 = arith.constant 0 : index
    %4 = vector.load %arg4[%c0_5, %c0_6, %c0_7] : memref<1x32x1xf32, #tpu.memory_space<vmem>>, vector<1x32x1xf32>
    %5 = vector.shape_cast %4 : vector<1x32x1xf32> to vector<32x1xf32>
    %cst = arith.constant dense<0.000000e+00> : vector<32x16xf32>
    %6 = tpu.matmul %3, %1, %cst {dimension_numbers = #tpu.dot_dimension_numbers<[1], [0], [0], [1], [0, 0, 1, 1], [], []>} : vector<32x32xf32>, vector<32x16xf32>, vector<32x16xf32> -> vector<32x16xf32>
    %7 = vector.broadcast %5 : vector<32x1xf32> to vector<32x16xf32>
    %8 = arith.addf %6, %7 : vector<32x16xf32>
    %cst_8 = arith.constant 0.000000e+00 : f32
    %9 = vector.broadcast %cst_8 : f32 to vector<32x16xf32>
    %10 = arith.maximumf %8, %9 : vector<32x16xf32>
    %c0_9 = arith.constant 0 : index
    %c0_10 = arith.constant 0 : index
    %11 = vector.load %arg5[%c0_9, %c0_10] : memref<16x4xf32, #tpu.memory_space<vmem>>, vector<16x4xf32>
    %cst_11 = arith.constant dense<0.000000e+00> : vector<32x4xf32>
    %12 = tpu.matmul %10, %11, %cst_11 {dimension_numbers = #tpu.dot_dimension_numbers<[1], [0], [0], [1], [0, 0, 1, 1], [], []>} : vector<32x16xf32>, vector<16x4xf32>, vector<32x4xf32> -> vector<32x4xf32>
    %c0_12 = arith.constant 0 : index
    %c0_13 = arith.constant 0 : index
    %c0_14 = arith.constant 0 : index
    %13 = vector.load %arg6[%c0_12, %c0_13, %c0_14] : memref<1x1x4xf32, #tpu.memory_space<vmem>>, vector<1x1x4xf32>
    %14 = vector.shape_cast %13 : vector<1x1x4xf32> to vector<1x4xf32>
    %15 = vector.broadcast %14 : vector<1x4xf32> to vector<32x4xf32>
    %16 = arith.mulf %12, %15 : vector<32x4xf32>
    %c0_15 = arith.constant 0 : index
    %c0_16 = arith.constant 0 : index
    %c0_17 = arith.constant 0 : index
    %17 = vector.load %arg7[%c0_15, %c0_16, %c0_17] : memref<1x32x4xf32, #tpu.memory_space<vmem>>, vector<1x32x4xf32>
    %18 = vector.shape_cast %17 : vector<1x32x4xf32> to vector<32x4xf32>
    %19 = vector.shape_cast %16 : vector<32x4xf32> to vector<1x32x4xf32>
    tpu.vector_store %arg7[%c0_15, %c0_16, %c0_17], %19 {strides = array<i32>} : memref<1x32x4xf32, #tpu.memory_space<vmem>>, vector<1x32x4xf32>,
    return
  }
  func.func @transform_0(%arg0: i32, %arg1: i32) -> (i32, i32, i32) {
    %c0_i32 = arith.constant 0 : i32
    %c0_i32_0 = arith.constant 0 : i32
    return %arg1, %arg0, %c0_i32 : i32, i32, i32
  }
  func.func @transform_1(%arg0: i32, %arg1: i32) -> (i32, i32, i32) {
    %c0_i32 = arith.constant 0 : i32
    %c0_i32_0 = arith.constant 0 : i32
    %c0_i32_1 = arith.constant 0 : i32
    return %arg0, %c0_i32, %c0_i32_0 : i32, i32, i32
  }
  func.func @transform_2(%arg0: i32, %arg1: i32) -> (i32, i32, i32) {
    %c0_i32 = arith.constant 0 : i32
    %c0_i32_0 = arith.constant 0 : i32
    %c0_i32_1 = arith.constant 0 : i32
    return %arg0, %c0_i32, %c0_i32_0 : i32, i32, i32
  }
  func.func @transform_3(%arg0: i32, %arg1: i32) -> (i32, i32) {
    %c0_i32 = arith.constant 0 : i32
    %c0_i32_0 = arith.constant 0 : i32
    %c0_i32_1 = arith.constant 0 : i32
    return %c0_i32, %c0_i32_0 : i32, i32
  }
  func.func @transform_4(%arg0: i32, %arg1: i32) -> (i32, i32, i32) {
    %c0_i32 = arith.constant 0 : i32
    %c0_i32_0 = arith.constant 0 : i32
    %c0_i32_1 = arith.constant 0 : i32
    return %arg1, %c0_i32, %c0_i32_0 : i32, i32, i32
  }
  func.func @transform_5(%arg0: i32, %arg1: i32) -> (i32, i32, i32) {
    %c0_i32 = arith.constant 0 : i32
    %c0_i32_0 = arith.constant 0 : i32
    return %arg1, %arg0, %c0_i32 : i32, i32, i32
  }
}

</mosaic_0001>

<bundles_post_ra>
// kernel: tpu_custom_call.1
= control target key start
LH: loop header
LB: loop body
LE: loop exit
PB: predicated region body
PF: predicated region fallthrough
CT: control target
= control target key end

     0   :  { %s850_s18 = smov 0   ;;  %s852_s19 = smov 0   ;;  %s928_s0 = inlined_call_operand.vmem [shape: f32[2,32,16], index: 0, kind: input, shape index: {}]   ;;  %s929_s1 = inlined_call_operand.vmem [shape: f32[1,32,32], index: 1, kind: input, shape index: {}]   ;;  %s930_s2 = inlined_call_operand.vmem [shape: f32[1,32,1], index: 2, kind: input, shape index: {}]   ;;  %s931_s3 = inlined_call_operand.vmem [shape: f32[16,4], index: 3, kind: input, shape index: {}]   ;;  %s932_s4 = inlined_call_operand.vmem [shape: f32[2,1,4], index: 4, kind: input, shape index: {}]   ;;  %s933_s5 = inlined_call_operand.vmem [shape: f32[2,32,4], index: 5, kind: output, shape index: {}]  }
   0x1   :  { %s854_s20 = smov 0  }
   0x2 LB: > { %s24_s21 = sadd.s32 1, %s813_s19  ;;  %p700_p0 = scmp.ge.s32.totalorder %s817_s20, 1  ;;  %s817_s20 = sphi %s854_s20, %s15_s20   ;;  %s813_s19 = sphi %s852_s19, %s935_s19   ;;  %s809_s18 = sphi %s850_s18, %s934_s18  }
   0x3   : > { %p25_p1 = scmp.ge.s32.totalorder %s24_s21, 2  ;;  %p236_p2 = scmp.lt.s32.totalorder %s817_s20, 3 }
   0x5   : > { %s937_s21 = smov (%p25_p1, %s24_s21), 0  ;;  %p237_p3 = pnand %p700_p0, %p236_p2 }
   0x6   : > { %p286_p4 = scmp.lt.s32.totalorder (!%p237_p3), %s809_s18, 1  ;;  %v322_v0 = vld [vmem:[%s929_s1] sm:$0xff] (!%p237_p3)  ;;  %vm350_vm0 = vcmask (!%p237_p3), 261120   ;;  %v819_v1 = vmov (!%p237_p3), 0   ;;  %v328_v3 = vld [vmem:[%s930_s2 + $0x10] sm:$0xff] (!%p237_p3)  ;;  %v327_v4 = vld [vmem:[%s930_s2 + $0x8] sm:$0xff] (!%p237_p3) }
   0x7   : > { %240 = sbr.rel (%p237_p3) target bundleno = 466 (0x1d2), region = 40  ;;  %740 = vmatprep.mubr.msk.f32.mxu0 (!%p237_p3), %vm350_vm0, %v322_v0  ;;  %793 = vset.pattern.permute.xlu0 (!%p237_p3), %v819_v1  ;;  %v326_v2 = vld [vmem:[%s930_s2] sm:$0xff] (!%p237_p3)  ;;  %v329_v5 = vld [vmem:[%s930_s2 + $0x18] sm:$0xff] (!%p237_p3)  ;;  %v323_v12 = vld [vmem:[%s929_s1 + $0x8] sm:$0xff] (!%p237_p3)  ;;  %vm454_vm1 = vcmask (!%p237_p3), 130048   ;;  %vm563_vm2 = vcmask (!%p237_p3), 31744  }
   0x8   : > { %332 = vperm.xlu0 (!%p237_p3), %793, %v326_v2   ;;  %794 = vset.pattern.permute.xlu1 (!%p237_p3), %v819_v1  ;;  %v324_v13 = vld [vmem:[%s929_s1 + $0x10] sm:$0xff] (!%p237_p3)  ;;  %v325_v14 = vld [vmem:[%s929_s1 + $0x18] sm:$0xff] (!%p237_p3)  ;;  %v452_v15 = vld [vmem:[%s931_s3] sm:$0xff] (!%p237_p3) }
   0x9   : > { %342 = vperm.xlu1 (!%p237_p3), %794, %v328_v3   ;;  %v453_v16 = vld [vmem:[%s931_s3 + $0x8] sm:$0xff] (!%p237_p3) }
   0xa   : > { %v764_v17 = vpack.c.bf16 (!%p237_p3), %v453_v16, %v452_v15 }
   0xc   : > { %337 = vperm.xlu0 (!%p237_p3), %793, %v327_v4   ;;  %765 = vmatprep.subr.bf16.mxu1 (!%p237_p3), %v764_v17 }
   0xd   : > { %347 = vperm.xlu1 (!%p237_p3), %794, %v329_v5   ;;  %767 = vmatpush3.bf16.msra.mxu1 (!%p237_p3), %v764_v17 }
   0xe   : > { %s939_s18 = smov (!%p286_p4, %s809_s18), 1 }
   0xf   : > { %s716_s30 = sshll.u32 %s939_s18, 5  ;;  %s307_s27 = scalar_lea.vmem %s932_s4, %s939_s18 }
  0x10   : > { %s293_s10 = scalar_lea.vmem %s928_s0, %s716_s30  ;;  %v713_v34 = vld [vmem:[%s307_s27] ss:$0 sm:$0xff]  ;;  %s316_s6 = scalar_lea.vmem %s933_s5, %s716_s30 }
  0x11   : > { %v318_v6 = vld [vmem:[%s293_s10] sm:$0xff]  ;;  %v319_v7 = vld [vmem:[%s293_s10 + $0x8] sm:$0xff]  ;;  %v320_v8 = vld [vmem:[%s293_s10 + $0x10] sm:$0xff] }
  0x12   : > { %v756_v9 = vpack.c.bf16 %v319_v7, %v318_v6  ;;  %v321_v10 = vld [vmem:[%s293_s10 + $0x18] sm:$0xff] }
  0x13   : > { %v760_v11 = vpack.c.bf16 %v321_v10, %v320_v8 }
  0x14   : > { %757 = vmatprep.subr.bf16.mxu0 %v756_v9 }
  0x15   : > { %759 = vmatpush3.bf16.msra.mxu0 %v756_v9 }
  0x16   : > { %761 = vmatprep.subr.bf16.mxu0 %v760_v11 }
  0x19   : > { %763 = vmatpush3.bf16.msra.mxu0 %v760_v11 }
  0x1c   : > { %741 = vmatmul.mubr.msk.f32.vlgmr.msra.gmra.mrb[0].mxu0 %vm350_vm0, %v323_v12 }
  0x1d   : > { %743 = vmatprep.mubr.msk.f32.mxu0 %vm350_vm0, %v324_v13 }
  0x20   : > { %744 = vmatmul.mubr.msk.f32.gmra.mrb[2].mxu0 %vm350_vm0, %v325_v14 }
  0x87   : > { %v333_v18 = vpop.permute.xlu0 %332 }
  0x88   : > { %v343_v19 = vpop.permute.xlu1 %342 }
  0x8b   : > { %v338_v20 = vpop.permute.xlu0 %337 }
  0x8c   : > { %v348_v26 = vpop.permute.xlu1 %347 }
  0xef   : > { %v742_v21 = vpop.f32.mrb[0].mxu0 }
  0xf0   : > { %v435_v22 = vadd.f32 %v742_v21, %v338_v20  ;;  %v429_v23 = vpop.f32.mrb[1].mxu0 }
  0xf1   : > { %v430_v24 = vadd.f32 %v429_v23, %v333_v18 }
  0xf2   : > { %v449_v28 = vmax.f32 %v435_v22, 0.0 }
  0xf3   : > { %v448_v25 = vmax.f32 %v430_v24, 0.0  ;;  %v745_v27 = vpop.f32.mrb[2].mxu0 }
  0xf4   : > { %v445_v29 = vadd.f32 %v745_v27, %v348_v26  ;;  %v439_v30 = vpop.f32.mrb[3].mxu0 }
  0xf5   : > { %v440_v31 = vadd.f32 %v439_v30, %v343_v19  ;;  %750 = vmatprep.mubr.msk.f32.mxu1 %vm454_vm1, %v448_v25 }
  0xf6   : > { %751 = vmatmul.mubr.msk.f32.vlgmr.msra.gmra.mrb[0].mxu1 %vm454_vm1, %v449_v28  ;;  %v451_v33 = vmax.f32 %v445_v29, 0.0 }
  0xf7   : > { %v450_v32 = vmax.f32 %v440_v31, 0.0 }
  0xf9   : > { %753 = vmatprep.mubr.msk.f32.mxu1 %vm454_vm1, %v450_v32 }
  0xfa   : > { %754 = vmatmul.mubr.msk.f32.gmra.mrb[2].mxu1 %vm454_vm1, %v451_v33 }
 0x1c9   : > { %v752_v35 = vpop.f32.mrb[0].mxu1 }
 0x1ca   : > { %v560_v36 = vmul.f32 %v752_v35, %v713_v34  ;;  %v533_v37 = vpop.f32.mrb[1].mxu1 }
 0x1cb   : > { %v559_v38 = vmul.f32 %v713_v34, %v533_v37 }
 0x1cc   : > { %565 = vst.msk [vmem:[%s316_s6 + $0x8] sm:$0xff] %vm563_vm2, %v560_v36 }
 0x1cd   : > { %564 = vst.msk [vmem:[%s316_s6] sm:$0xff] %vm563_vm2, %v559_v38  ;;  %v755_v39 = vpop.f32.mrb[2].mxu1 }
 0x1ce   : > { %v562_v40 = vmul.f32 %v755_v39, %v713_v34  ;;  %v543_v41 = vpop.f32.mrb[3].mxu1 }
 0x1cf   : > { %v561_v42 = vmul.f32 %v713_v34, %v543_v41 }
 0x1d0   : > { %567 = vst.msk [vmem:[%s316_s6 + $0x18] sm:$0xff] %vm563_vm2, %v562_v40 }
 0x1d1   : > { %566 = vst.msk [vmem:[%s316_s6 + $0x10] sm:$0xff] %vm563_vm2, %v561_v42 }
 0x1d2 PF: > { %s15_s20 = sadd.s32 1, %s817_s20   ;;  %s934_s18 = smov %s813_s19 }
 0x1d3   : > { %p12_p5 = scmp.ge.s32.totalorder %s15_s20, 4   ;;  %s935_s19 = smov %s937_s21 }
 0x1d5   :  { %14 = sbr.rel (!%p12_p5) target bundleno = 2 (0x2), region = 79 }

</bundles_post_ra>
